<compile_context>
chip_gen: v7x
topology: tpu7x:2x2x1
jax: 0.10.0
libtpu: 0.0.40
codegen_flags: <defaults>
</compile_context>

<pallas_src>
import functools

import jax
import jax.numpy as jnp
from jax.experimental import pallas as pl
from jax.experimental.pallas import tpu as pltpu


def _pair(v):
    if isinstance(v, (tuple, list)):
        if len(v) != 2:
            raise ValueError(f"expected an int or a 2-tuple, got {v!r}")
        return int(v[0]), int(v[1])
    return int(v), int(v)


def _min_identity(dtype):
    """Fill value that is the identity for `min` (== MaxPool's -inf, negated)."""
    dtype = jnp.dtype(dtype)
    if jnp.issubdtype(dtype, jnp.floating):
        return float("inf")
    if jnp.issubdtype(dtype, jnp.integer):
        return int(jnp.iinfo(dtype).max)
    if dtype == jnp.bool_:
        return True
    raise NotImplementedError(f"min_pool2d: unsupported dtype {dtype}")


def _ds(start, size, stride):
    return pl.ds(start, size) if stride == 1 else pl.ds(start, size, stride)


def _minpool_kernel(x_ref, o_ref, *scratch,
                    kh, kw, sh, sw, dh, dw, ph, pw,
                    h, w, ho, wo, fill, factorize):
    """One channels-last block: x_ref (h, w, C_BLK) -> o_ref (ho, wo, C_BLK).

    Lane dim = channels (contiguous, lane-dense loads and stores); pooling
    strides live only on the leading (H) and sublane (W) dims.
    """
    scratch = list(scratch)

    if ph or pw:
        # Fused padding: build the padded tile in VMEM.  Only the border
        # strips get the fill value; the interior is a single tile copy.
        pad_ref = scratch.pop(0)                       # (h + 2ph, w + 2pw, cb)
        hp_, wp_, cb = pad_ref.shape
        dt = pad_ref.dtype
        if ph:
            pad_ref[0:ph, :, :] = jnp.full((ph, wp_, cb), fill, dtype=dt)
            pad_ref[ph + h:hp_, :, :] = jnp.full((hp_ - ph - h, wp_, cb), fill, dtype=dt)
        if pw:
            pad_ref[ph:ph + h, 0:pw, :] = jnp.full((h, pw, cb), fill, dtype=dt)
            pad_ref[ph:ph + h, pw + w:wp_, :] = jnp.full((h, wp_ - pw - w, cb), fill, dtype=dt)
        pad_ref[ph:ph + h, pw:pw + w, :] = x_ref[...]
        src = pad_ref
    else:
        src = x_ref

    if factorize:
        # Overlapping windows: compute horizontal (kw) row-mins once, then the
        # vertical (kh) min over row-mins -> kh + kw loads per output element.
        hmin_ref = scratch.pop(0)                      # (rows, wo, cb)
        rows = hmin_ref.shape[0]
        hm = src[pl.ds(0, rows), _ds(0, wo, sw), :]
        for dj in range(1, kw):
            hm = jnp.minimum(hm, src[pl.ds(0, rows), _ds(dj * dw, wo, sw), :])
        hmin_ref[...] = hm
        acc = hmin_ref[_ds(0, ho, sh), :, :]
        for di in range(1, kh):
            acc = jnp.minimum(acc, hmin_ref[_ds(di * dh, ho, sh), :, :])
    else:
        # Non-overlapping (e.g. stride == kernel, the PyTorch default): each
        # element is read exactly once; direct kh*kw window reduction.
        acc = src[_ds(0, ho, sh), _ds(0, wo, sw), :]
        for di in range(kh):
            for dj in range(kw):
                if di == 0 and dj == 0:
                    continue
                win = src[_ds(di * dh, ho, sh), _ds(dj * dw, wo, sw), :]
                acc = jnp.minimum(acc, win)

    o_ref[...] = acc.astype(o_ref.dtype)


def min_pool2d(x, kernel_size, stride=None, padding=0, dilation=1,
               return_indices=False, ceil_mode=False):
    """Equivalent of MinPool(kernel_size, ndim=2, stride, padding) on NCHW x."""
    if return_indices or ceil_mode:
        # TODO(synk): return_indices / ceil_mode have no clean Pallas mapping here.
        raise NotImplementedError("return_indices / ceil_mode not supported")

    kh, kw = _pair(kernel_size)
    sh, sw = _pair(stride) if stride is not None else (kh, kw)
    ph, pw = _pair(padding)
    dh, dw = _pair(dilation)

    n, c, h, w = x.shape
    eh, ew = dh * (kh - 1) + 1, dw * (kw - 1) + 1      # effective window extent
    hp, wp = h + 2 * ph, w + 2 * pw
    ho = (hp - eh) // sh + 1                            # floor (ceil_mode=False)
    wo = (wp - ew) // sw + 1
    if ho <= 0 or wo <= 0:
        raise ValueError("pooling window larger than the (padded) input")

    b = n * c
    dtype = x.dtype
    isz = jnp.dtype(dtype).itemsize
    fill = _min_identity(dtype)

    # Channels-last so channels sit on the lane dim (lane-dense in/out).
    xt = jnp.transpose(x, (2, 3, 0, 1)).reshape(h, w, b)

    # Channel-block size: target ~4 MiB input blocks so per-grid-step overhead
    # is amortized; the lane block must be a multiple of 128 or the full extent.
    target = 4 << 20
    plane_bytes = max(h * w, hp * wp if (ph or pw) else 0) * isz
    if b <= 128 or b * plane_bytes <= target:
        c_blk = b
    else:
        c_blk = max(128, (target // max(plane_bytes, 1)) // 128 * 128)
        c_blk = min(c_blk, b)

    factorize = (sh < eh) or (sw < ew)                  # overlapping windows

    scratch_shapes = []
    scratch_bytes = 0
    if ph or pw:
        scratch_shapes.append(pltpu.VMEM((hp, wp, c_blk), dtype))
        scratch_bytes += hp * wp * c_blk * isz
    if factorize:
        rows = (ho - 1) * sh + eh
        scratch_shapes.append(pltpu.VMEM((rows, wo, c_blk), dtype))
        scratch_bytes += rows * wo * c_blk * isz

    kernel = functools.partial(
        _minpool_kernel, kh=kh, kw=kw, sh=sh, sw=sw, dh=dh, dw=dw,
        ph=ph, pw=pw, h=h, w=w, ho=ho, wo=wo, fill=fill, factorize=factorize)

    # Double-buffered in/out blocks + scratch, with headroom; stays within the
    # scoped-VMEM limits of v5e/v6e/v7x.
    est = 2 * (h * w + ho * wo) * c_blk * isz + scratch_bytes
    vmem_limit = int(min(48 << 20, max(32 << 20, 2 * est)))

    out_t = pl.pallas_call(
        kernel,
        out_shape=jax.ShapeDtypeStruct((ho, wo, b), dtype),
        grid_spec=pltpu.PrefetchScalarGridSpec(
            num_scalar_prefetch=0,
            grid=(pl.cdiv(b, c_blk),),
            in_specs=[pl.BlockSpec((h, w, c_blk), lambda i: (0, 0, i))],
            out_specs=pl.BlockSpec((ho, wo, c_blk), lambda i: (0, 0, i)),
            scratch_shapes=scratch_shapes,
        ),
        compiler_params=pltpu.CompilerParams(
            dimension_semantics=("parallel",),
            vmem_limit_bytes=vmem_limit),
    )(xt)

    return jnp.transpose(out_t.reshape(ho, wo, n, c), (2, 3, 0, 1))


def _min_pool2d_ref(x, kernel_size, stride=None, padding=0, dilation=1):
    """Pure-JAX reference: -maxpool(-x) via reduce_window."""
    kh, kw = _pair(kernel_size)
    sh, sw = _pair(stride) if stride is not None else (kh, kw)
    ph, pw = _pair(padding)
    dh, dw = _pair(dilation)
    pooled = jax.lax.reduce_window(
        -x, -jnp.inf, jax.lax.max,
        window_dimensions=(1, 1, kh, kw),
        window_strides=(1, 1, sh, sw),
        padding=((0, 0), (0, 0), (ph, ph), (pw, pw)),
        window_dilation=(1, 1, dh, dw))
    return -pooled


if __name__ == "__main__":
    key = jax.random.PRNGKey(0)
    x = jax.random.normal(key, (2, 4, 16, 16), dtype=jnp.float32)

    # MinPool(kernel_size=2) -> PyTorch defaults: stride=2, padding=0.
    out = jax.block_until_ready(min_pool2d(x, kernel_size=2))
    ref = _min_pool2d_ref(x, kernel_size=2)
    assert out.shape == (2, 4, 8, 8), out.shape
    assert jnp.allclose(out, ref, atol=1e-6), "mismatch vs reference (k=2)"

    # Overlapping + padded variant exercises the fused-padding (border-fill)
    # scratch and the factorized (row-min) reduction paths.
    out2 = jax.block_until_ready(min_pool2d(x, kernel_size=3, stride=2, padding=1))
    ref2 = _min_pool2d_ref(x, kernel_size=3, stride=2, padding=1)
    assert out2.shape == ref2.shape, (out2.shape, ref2.shape)
    assert jnp.allclose(out2, ref2, atol=1e-6), "mismatch vs reference (k=3,s=2,p=1)"

    print("KERNEL_OK")
</pallas_src>

<mosaic_0001>
module attributes {stable_mosaic.version = 11 : i64} {
  func.func @_minpool_kernel(%arg0: i32, %arg1: memref<16x16x8xf32, #tpu.memory_space<vmem>>, %arg2: memref<8x8x8xf32, #tpu.memory_space<vmem>>) attributes {dimension_semantics = [#tpu.dimension_semantics<parallel>], iteration_bounds = array<i64: 1>, scalar_prefetch = 0 : i64, scratch_operands = 0 : i64, tpu.core_type = #tpu.core_type<tc>, window_params = [{transform_indices = @transform_0, window_bounds = array<i64: 16, 16, 8>}, {transform_indices = @transform_1, window_bounds = array<i64: 8, 8, 8>}]} {
    %c0 = arith.constant 0 : index
    %c0_0 = arith.constant 0 : index
    %c0_1 = arith.constant 0 : index
    %0 = tpu.strided_load %arg1[%c0, %c0_0, %c0_1] {strides = array<i32: 2, 2, 1>} : memref<16x16x8xf32, #tpu.memory_space<vmem>>, vector<8x8x8xf32>
    %c0_2 = arith.constant 0 : index
    %c1 = arith.constant 1 : index
    %c0_3 = arith.constant 0 : index
    %1 = tpu.strided_load %arg1[%c0_2, %c1, %c0_3] {strides = array<i32: 2, 2, 1>} : memref<16x16x8xf32, #tpu.memory_space<vmem>>, vector<8x8x8xf32>
    %2 = arith.minimumf %0, %1 : vector<8x8x8xf32>
    %c1_4 = arith.constant 1 : index
    %c0_5 = arith.constant 0 : index
    %c0_6 = arith.constant 0 : index
    %3 = tpu.strided_load %arg1[%c1_4, %c0_5, %c0_6] {strides = array<i32: 2, 2, 1>} : memref<16x16x8xf32, #tpu.memory_space<vmem>>, vector<8x8x8xf32>
    %4 = arith.minimumf %2, %3 : vector<8x8x8xf32>
    %c1_7 = arith.constant 1 : index
    %c1_8 = arith.constant 1 : index
    %c0_9 = arith.constant 0 : index
    %5 = tpu.strided_load %arg1[%c1_7, %c1_8, %c0_9] {strides = array<i32: 2, 2, 1>} : memref<16x16x8xf32, #tpu.memory_space<vmem>>, vector<8x8x8xf32>
    %6 = arith.minimumf %4, %5 : vector<8x8x8xf32>
    %c0_10 = arith.constant 0 : index
    %c0_11 = arith.constant 0 : index
    %c0_12 = arith.constant 0 : index
    %7 = vector.load %arg2[%c0_10, %c0_11, %c0_12] : memref<8x8x8xf32, #tpu.memory_space<vmem>>, vector<8x8x8xf32>
    tpu.vector_store %arg2[%c0_10, %c0_11, %c0_12], %6 {strides = array<i32>} : memref<8x8x8xf32, #tpu.memory_space<vmem>>, vector<8x8x8xf32>,
    return
  }
  func.func @transform_0(%arg0: i32) -> (i32, i32, i32) {
    %c0_i32 = arith.constant 0 : i32
    %c0_i32_0 = arith.constant 0 : i32
    %c0_i32_1 = arith.constant 0 : i32
    return %c0_i32, %c0_i32_0, %arg0 : i32, i32, i32
  }
  func.func @transform_1(%arg0: i32) -> (i32, i32, i32) {
    %c0_i32 = arith.constant 0 : i32
    %c0_i32_0 = arith.constant 0 : i32
    %c0_i32_1 = arith.constant 0 : i32
    return %c0_i32, %c0_i32_0, %arg0 : i32, i32, i32
  }
}

</mosaic_0001>

<bundles_post_ra>
// kernel: tpu_custom_call.1
= control target key start
LH: loop header
LB: loop body
LE: loop exit
PB: predicated region body
PF: predicated region fallthrough
CT: control target
= control target key end

     0   :  { %vm96_vm0 = vcmask 64512   ;;  %s323_s0 = inlined_call_operand.vmem [shape: f32[16,16,8], index: 0, kind: input, shape index: {}]   ;;  %s324_s1 = inlined_call_operand.hbm [shape: f32[8,8,8], index: 1, kind: output, shape index: {}]  }
   0x1   :  { %v9_v0 = vld [vmem:[%s323_s0] ss:$2 sm:$0xff]  ;;  %v143_v1 = vld [vmem:[%s323_s0 + $0x1] ss:$2 sm:$0xff]  ;;  %v151_v2 = vld [vmem:[%s323_s0 + $0x10] ss:$2 sm:$0xff] }
   0x2   :  { %v40_v3 = vmin.f32 %v9_v0, %v143_v1  ;;  %v159_v4 = vld [vmem:[%s323_s0 + $0x11] ss:$2 sm:$0xff]  ;;  %v136_v5 = vld [vmem:[%s323_s0 + $0x20] ss:$2 sm:$0xff]  ;;  %v144_v6 = vld [vmem:[%s323_s0 + $0x21] ss:$2 sm:$0xff] }
   0x3   :  { %v152_v7 = vld [vmem:[%s323_s0 + $0x30] ss:$2 sm:$0xff]  ;;  %v41_v9 = vmin.f32 %v136_v5, %v144_v6  ;;  %v137_v10 = vld [vmem:[%s323_s0 + $0x40] ss:$2 sm:$0xff]  ;;  %v145_v11 = vld [vmem:[%s323_s0 + $0x41] ss:$2 sm:$0xff] }
   0x4   :  { %v64_v8 = vmin.f32 %v40_v3, %v151_v2  ;;  %v153_v12 = vld [vmem:[%s323_s0 + $0x50] ss:$2 sm:$0xff]  ;;  %v160_v13 = vld [vmem:[%s323_s0 + $0x31] ss:$2 sm:$0xff]  ;;  %v42_v14 = vmin.f32 %v137_v10, %v145_v11  ;;  %v138_v15 = vld [vmem:[%s323_s0 + $0x60] ss:$2 sm:$0xff] }
   0x5   :  { %v146_v16 = vld [vmem:[%s323_s0 + $0x61] ss:$2 sm:$0xff]  ;;  %v65_v18 = vmin.f32 %v41_v9, %v152_v7  ;;  %v161_v19 = vld [vmem:[%s323_s0 + $0x51] ss:$2 sm:$0xff]  ;;  %v154_v21 = vld [vmem:[%s323_s0 + $0x70] ss:$2 sm:$0xff] }
   0x6   :  { %v88_v17 = vmin.f32 %v64_v8, %v159_v4  ;;  %v43_v20 = vmin.f32 %v138_v15, %v146_v16  ;;  %v139_v22 = vld [vmem:[%s323_s0 + $0x80] ss:$2 sm:$0xff]  ;;  %v66_v23 = vmin.f32 %v42_v14, %v153_v12  ;;  %v162_v24 = vld [vmem:[%s323_s0 + $0x71] ss:$2 sm:$0xff]  ;;  %v147_v25 = vld [vmem:[%s323_s0 + $0x81] ss:$2 sm:$0xff] }
   0x7   :  { %v155_v26 = vld [vmem:[%s323_s0 + $0x90] ss:$2 sm:$0xff]  ;;  %v89_v27 = vmin.f32 %v65_v18, %v160_v13  ;;  %v44_v29 = vmin.f32 %v139_v22, %v147_v25  ;;  %v140_v30 = vld [vmem:[%s323_s0 + $0xa0] ss:$2 sm:$0xff]  ;;  %v148_v31 = vld [vmem:[%s323_s0 + $0xa1] ss:$2 sm:$0xff] }
   0x8   :  { %97 = vst.msk [vmem:[#allocation2] sm:$0xff] %vm96_vm0, %v88_v17  ;;  %v67_v28 = vmin.f32 %v43_v20, %v154_v21  ;;  %v156_v32 = vld [vmem:[%s323_s0 + $0xb0] ss:$2 sm:$0xff]  ;;  %v90_v33 = vmin.f32 %v66_v23, %v161_v19  ;;  %v163_v34 = vld [vmem:[%s323_s0 + $0x91] ss:$2 sm:$0xff]  ;;  %v45_v35 = vmin.f32 %v140_v30, %v148_v31 }
   0x9   :  { %v141_v36 = vld [vmem:[%s323_s0 + $0xc0] ss:$2 sm:$0xff]  ;;  %v149_v37 = vld [vmem:[%s323_s0 + $0xc1] ss:$2 sm:$0xff]  ;;  %98 = vst.msk [vmem:[#allocation2 + $0x8] sm:$0xff] %vm96_vm0, %v89_v27  ;;  %v68_v39 = vmin.f32 %v44_v29, %v155_v26 }
   0xa   :  { %v91_v38 = vmin.f32 %v67_v28, %v162_v24  ;;  %v164_v40 = vld [vmem:[%s323_s0 + $0xb1] ss:$2 sm:$0xff]  ;;  %v46_v41 = vmin.f32 %v141_v36, %v149_v37  ;;  %v157_v42 = vld [vmem:[%s323_s0 + $0xd0] ss:$2 sm:$0xff]  ;;  %v142_v43 = vld [vmem:[%s323_s0 + $0xe0] ss:$2 sm:$0xff]  ;;  %v69_v44 = vmin.f32 %v45_v35, %v156_v32 }
   0xb   :  { %99 = vst.msk [vmem:[#allocation2 + $0x10] sm:$0xff] %vm96_vm0, %v90_v33  ;;  %v165_v45 = vld [vmem:[%s323_s0 + $0xd1] ss:$2 sm:$0xff]  ;;  %v150_v46 = vld [vmem:[%s323_s0 + $0xe1] ss:$2 sm:$0xff]  ;;  %v92_v48 = vmin.f32 %v68_v39, %v163_v34 }
   0xc   :  { %v158_v47 = vld [vmem:[%s323_s0 + $0xf0] ss:$2 sm:$0xff]  ;;  %100 = vst.msk [vmem:[#allocation2 + $0x18] sm:$0xff] %vm96_vm0, %v91_v38  ;;  %v70_v49 = vmin.f32 %v46_v41, %v157_v42  ;;  %v47_v50 = vmin.f32 %v142_v43, %v150_v46 }
   0xd   :  { %6 = vsyncpa [#allocation3], 0  ;;  %v93_v51 = vmin.f32 %v69_v44, %v164_v40  ;;  %v166_v52 = vld [vmem:[%s323_s0 + $0xf1] ss:$2 sm:$0xff]  ;;  %s194_s12 = smov [#allocation2]   ;;  %101 = vst.msk [vmem:[#allocation2 + $0x20] sm:$0xff] %vm96_vm0, %v92_v48 }
   0xe   :  { %s110_s13 = sshll.u32 %s194_s12, 4  ;;  %v94_v53 = vmin.f32 %v70_v49, %v165_v45  ;;  %v71_v54 = vmin.f32 %v47_v50, %v158_v47  ;;  %s111_s13 = int_to_ptr.vmem [resolvable:$true] %s110_s13 }
   0xf   :  { %102 = vst.msk [vmem:[#allocation2 + $0x28] sm:$0xff] %vm96_vm0, %v93_v51  ;;  %s170_s14 = scalar_lea.vmem %s111_s13, 1024  ;;  %p175_p1 = scmp.lt.s32.totalorder %s111_s13, %s111_s13 }
  0x10   :  { %103 = vst.msk [vmem:[#allocation2 + $0x30] sm:$0xff] %vm96_vm0, %v94_v53  ;;  %v95_v55 = vmin.f32 %v71_v54, %v166_v52  ;;  %p171_p0 = scmp.ne.s32.totalorder %s111_s13, %s170_s14  ;;  %p176_p2 = scmp.lt.s32.totalorder %s170_s14, %s170_s14 }
  0x12   :  { %104 = vst.msk [vmem:[#allocation2 + $0x38] sm:$0xff] %vm96_vm0, %v95_v55  ;;  %p177_p3 = por %p176_p2, %p175_p1 }
  0x14   :  { %p178_p4 = pnand %p177_p3, %p171_p0 }
  0x16   :  { %181 = shalt.err (!%p178_p4)
}
  0x17   :  { %s182_s16 = scalar_lea.hbm %s324_s1, 1024 }
  0x18   :  { %p183_p5 = scmp.ne.s32.totalorder %s324_s1, %s182_s16  ;;  %p186_p6 = scmp.lt.u32.totalorder %s182_s16, %s324_s1 }
  0x1a   :  { %p188_p7 = pnand %p186_p6, %p183_p5 }
  0x1c   :  { %191 = shalt.err (!%p188_p7)
}
  0x1d   :  { %s195_s21 = smov 128   ;;  %s196_s22 = smov 8  }
  0x1e   :  { %116 = dma.vmem_to_hbm [thread:$0]  %s111_s13, 1024, %s324_s1, [#allocation3], %s195_s21, %s195_s21, %s196_s22  }
  0x1f   :  { %192 = dma.done.wait [#allocation3], 1024  }
  0x20   :  { %193 = vsyncadd [#allocation3], 4294966272 }
  0x21   :  { %120 = vsyncpa [#allocation3], 1 }

</bundles_post_ra>
